<compile_context>
chip_gen: v5e
topology: v5e:2x2
jax: 0.10.0
libtpu: 0.0.40
codegen_flags: <defaults>
</compile_context>

<pallas_src>
import jax
import jax.numpy as jnp
from jax.experimental import pallas as pl
from jax.experimental.pallas import tpu as pltpu

LANE = 128


def policy_net_kernel(x_ref, w1_ref, b1_ref, w2_ref, b2_ref, w3_ref, b3_ref,
                      out_ref):
    out_dim = out_ref.shape[-1]

    # Cast x to bf16 inside the kernel (hidden under the DMA pipeline).
    x_bf = x_ref[...].astype(jnp.bfloat16)

    # fc1 + relu, fused relu+cast so only the bf16 copy of h1 stays live.
    h1 = jnp.maximum(
        jnp.dot(x_bf, w1_ref[...], preferred_element_type=jnp.float32)
        + b1_ref[...], 0.0).astype(jnp.bfloat16)

    # fc2 + relu (same fusion).
    h2 = jnp.maximum(
        jnp.dot(h1, w2_ref[...], preferred_element_type=jnp.float32)
        + b2_ref[...], 0.0).astype(jnp.bfloat16)

    # fc3 on the lane-padded (MXU-aligned) w3, then slice back to out_dim so
    # the sigmoid + store only touch the real lanes.
    logits = jnp.dot(h2, w3_ref[...], preferred_element_type=jnp.float32)
    z = logits[:, :out_dim] + b3_ref[:, :out_dim]

    # sigmoid(z) = 1 / (1 + exp(-z)); exp and reciprocal both go to the EUP.
    out_ref[...] = pl.reciprocal(1.0 + jnp.exp(-z), approx=True)


def _pick_tile_b(batch, max_tile_b):
    """Largest batch tile (multiple of 8) <= max_tile_b; for multi-tile
    batches use an even (>=2) number of grid steps so the 'parallel' batch
    axis puts work on both v7x TensorCores."""
    b8 = pl.cdiv(batch, 8) * 8
    if b8 <= max_tile_b:
        return b8
    n = pl.cdiv(b8, max_tile_b)
    n = n + (n % 2)                      # even grid length for v7x megacore
    return pl.cdiv(pl.cdiv(b8, n), 8) * 8


def prepare_params(params):
    """One-time (outside the forward path) conversion of PyTorch-layout
    params: bf16 MXU weights, f32 biases, final layer lane-padded to 128."""
    out_dim = params["w3"].shape[1]
    out_pad = pl.cdiv(out_dim, LANE) * LANE
    w3 = params["w3"]
    b3 = params["b3"]
    if out_pad != out_dim:
        w3 = jnp.pad(w3, ((0, 0), (0, out_pad - out_dim)))
        b3 = jnp.pad(b3, ((0, 0), (0, out_pad - out_dim)))
    return {
        "w1": params["w1"].astype(jnp.bfloat16),
        "b1": params["b1"].astype(jnp.float32),
        "w2": params["w2"].astype(jnp.bfloat16),
        "b2": params["b2"].astype(jnp.float32),
        "w3": w3.astype(jnp.bfloat16),
        "b3": b3.astype(jnp.float32),
        "out_dim": out_dim,
    }


def policy_net_forward(x, prepared, *, max_tile_b=2048):
    """x: [B, inp_dim] float32. prepared: output of prepare_params()."""
    w1, b1 = prepared["w1"], prepared["b1"]
    w2, b2 = prepared["w2"], prepared["b2"]
    w3, b3 = prepared["w3"], prepared["b3"]
    out_dim = prepared["out_dim"]

    B, inp_dim = x.shape
    hidden = w1.shape[1]
    out_pad = w3.shape[1]

    tile_b = _pick_tile_b(B, max_tile_b)
    b_pad = pl.cdiv(B, tile_b) * tile_b
    if b_pad != B:
        x = jnp.pad(x, ((0, b_pad - B), (0, 0)))
    x = x.astype(jnp.float32)

    grid = (b_pad // tile_b,)
    resident = lambda shape: pl.BlockSpec(shape, lambda i: (0, 0))

    flops = 2 * b_pad * (inp_dim * hidden + hidden * hidden + hidden * out_pad)
    bytes_accessed = (x.size * 4                                   # x in f32
                      + (w1.size + w2.size + w3.size) * 2          # bf16 weights
                      + (b1.size + b2.size + b3.size) * 4          # f32 biases
                      + b_pad * out_dim * 4)                       # unpadded out

    out = pl.pallas_call(
        policy_net_kernel,
        out_shape=jax.ShapeDtypeStruct((b_pad, out_dim), jnp.float32),
        grid_spec=pltpu.PrefetchScalarGridSpec(
            num_scalar_prefetch=0,
            grid=grid,
            in_specs=[
                pl.BlockSpec((tile_b, inp_dim), lambda i: (i, 0)),
                resident(w1.shape), resident(b1.shape),
                resident(w2.shape), resident(b2.shape),
                resident(w3.shape), resident(b3.shape),
            ],
            out_specs=pl.BlockSpec((tile_b, out_dim), lambda i: (i, 0)),
        ),
        compiler_params=pltpu.CompilerParams(
            dimension_semantics=("parallel",),
            vmem_limit_bytes=48 << 20,   # headroom below v7x's 64 MiB physical
        ),
        cost_estimate=pl.CostEstimate(
            flops=flops,
            transcendentals=b_pad * out_dim,
            bytes_accessed=bytes_accessed,
        ),
    )(x, w1, b1, w2, b2, w3, b3)

    return out[:B]


def xavier_uniform(key, fan_in, fan_out):
    # matches nn.init.xavier_uniform_ (gain=1); returned as [in, out] layout
    bound = (6.0 / (fan_in + fan_out)) ** 0.5
    return jax.random.uniform(key, (fan_in, fan_out), jnp.float32,
                              minval=-bound, maxval=bound)


def linear_bias(key, fan_in, fan_out):
    # matches PyTorch nn.Linear default bias init: U(-1/sqrt(fan_in), +)
    bound = 1.0 / (fan_in ** 0.5)
    return jax.random.uniform(key, (1, fan_out), jnp.float32,
                              minval=-bound, maxval=bound)


def init_params(key, inp_dim, out_dim, hidden=256):
    ks = jax.random.split(key, 6)
    return {
        "w1": xavier_uniform(ks[0], inp_dim, hidden),
        "b1": linear_bias(ks[1], inp_dim, hidden),
        "w2": xavier_uniform(ks[2], hidden, hidden),
        "b2": linear_bias(ks[3], hidden, hidden),
        "w3": xavier_uniform(ks[4], hidden, out_dim),
        "b3": linear_bias(ks[5], hidden, out_dim),
    }


if __name__ == "__main__":
    key = jax.random.PRNGKey(0)
    k_x, k_p = jax.random.split(key)

    batch, inp_dim, out_dim = 8, 16, 8
    x = jax.random.normal(k_x, (batch, inp_dim), jnp.float32)
    params = init_params(k_p, inp_dim, out_dim)

    prepared = prepare_params(params)          # one-time, outside forward path
    out = policy_net_forward(x, prepared)
    out = jax.block_until_ready(out)

    # Pure-JAX f32 reference of the same math (PyTorch-equivalent forward).
    h1 = jnp.maximum(x @ params["w1"] + params["b1"], 0.0)
    h2 = jnp.maximum(h1 @ params["w2"] + params["b2"], 0.0)
    ref = jax.nn.sigmoid(h2 @ params["w3"] + params["b3"])

    assert out.shape == (batch, out_dim)
    # bf16 matmul operands (f32 accumulation) + approx reciprocal -> loosened
    # tolerance vs the f32 reference.
    assert jnp.allclose(out, ref, atol=2e-2, rtol=2e-2), \
        float(jnp.max(jnp.abs(out - ref)))

    print("KERNEL_OK")
</pallas_src>

<mosaic_0001>
module attributes {stable_mosaic.version = 11 : i64} {
  func.func @policy_net_kernel(%arg0: i32, %arg1: memref<8x16xf32, #tpu.memory_space<vmem>>, %arg2: memref<16x256xbf16, #tpu.memory_space<vmem>>, %arg3: memref<1x256xf32, #tpu.memory_space<vmem>>, %arg4: memref<256x256xbf16, #tpu.memory_space<vmem>>, %arg5: memref<1x256xf32, #tpu.memory_space<vmem>>, %arg6: memref<256x128xbf16, #tpu.memory_space<vmem>>, %arg7: memref<1x128xf32, #tpu.memory_space<vmem>>, %arg8: memref<8x8xf32, #tpu.memory_space<vmem>>) attributes {dimension_semantics = [#tpu.dimension_semantics<parallel>], iteration_bounds = array<i64: 1>, scalar_prefetch = 0 : i64, scratch_operands = 0 : i64, tpu.core_type = #tpu.core_type<tc>, window_params = [{transform_indices = @transform_0, window_bounds = array<i64: 8, 16>}, {pipeline_mode = #tpu.pipeline_mode<synchronous>, transform_indices = @transform_1, window_bounds = array<i64: 16, 256>}, {pipeline_mode = #tpu.pipeline_mode<synchronous>, transform_indices = @transform_2, window_bounds = array<i64: 1, 256>}, {pipeline_mode = #tpu.pipeline_mode<synchronous>, transform_indices = @transform_3, window_bounds = array<i64: 256, 256>}, {pipeline_mode = #tpu.pipeline_mode<synchronous>, transform_indices = @transform_4, window_bounds = array<i64: 1, 256>}, {pipeline_mode = #tpu.pipeline_mode<synchronous>, transform_indices = @transform_5, window_bounds = array<i64: 256, 128>}, {pipeline_mode = #tpu.pipeline_mode<synchronous>, transform_indices = @transform_6, window_bounds = array<i64: 1, 128>}, {transform_indices = @transform_7, window_bounds = array<i64: 8, 8>}]} {
    %c0 = arith.constant 0 : index
    %c0_0 = arith.constant 0 : index
    %0 = vector.load %arg1[%c0, %c0_0] : memref<8x16xf32, #tpu.memory_space<vmem>>, vector<8x16xf32>
    %1 = arith.truncf %0 : vector<8x16xf32> to vector<8x16xbf16>
    %c0_1 = arith.constant 0 : index
    %c0_2 = arith.constant 0 : index
    %2 = vector.load %arg2[%c0_1, %c0_2] : memref<16x256xbf16, #tpu.memory_space<vmem>>, vector<16x256xbf16>
    %cst = arith.constant dense<0.000000e+00> : vector<8x256xf32>
    %3 = tpu.matmul %1, %2, %cst {dimension_numbers = #tpu.dot_dimension_numbers<[1], [0], [0], [1], [0, 0, 1, 1], [], []>} : vector<8x16xbf16>, vector<16x256xbf16>, vector<8x256xf32> -> vector<8x256xf32>
    %c0_3 = arith.constant 0 : index
    %c0_4 = arith.constant 0 : index
    %4 = vector.load %arg3[%c0_3, %c0_4] : memref<1x256xf32, #tpu.memory_space<vmem>>, vector<1x256xf32>
    %5 = vector.broadcast %4 : vector<1x256xf32> to vector<8x256xf32>
    %6 = arith.addf %3, %5 : vector<8x256xf32>
    %cst_5 = arith.constant 0.000000e+00 : f32
    %7 = vector.broadcast %cst_5 : f32 to vector<8x256xf32>
    %8 = arith.maximumf %6, %7 : vector<8x256xf32>
    %9 = arith.truncf %8 : vector<8x256xf32> to vector<8x256xbf16>
    %c0_6 = arith.constant 0 : index
    %c0_7 = arith.constant 0 : index
    %10 = vector.load %arg4[%c0_6, %c0_7] : memref<256x256xbf16, #tpu.memory_space<vmem>>, vector<256x256xbf16>
    %cst_8 = arith.constant dense<0.000000e+00> : vector<8x256xf32>
    %11 = tpu.matmul %9, %10, %cst_8 {dimension_numbers = #tpu.dot_dimension_numbers<[1], [0], [0], [1], [0, 0, 1, 1], [], []>} : vector<8x256xbf16>, vector<256x256xbf16>, vector<8x256xf32> -> vector<8x256xf32>
    %c0_9 = arith.constant 0 : index
    %c0_10 = arith.constant 0 : index
    %12 = vector.load %arg5[%c0_9, %c0_10] : memref<1x256xf32, #tpu.memory_space<vmem>>, vector<1x256xf32>
    %13 = vector.broadcast %12 : vector<1x256xf32> to vector<8x256xf32>
    %14 = arith.addf %11, %13 : vector<8x256xf32>
    %cst_11 = arith.constant 0.000000e+00 : f32
    %15 = vector.broadcast %cst_11 : f32 to vector<8x256xf32>
    %16 = arith.maximumf %14, %15 : vector<8x256xf32>
    %17 = arith.truncf %16 : vector<8x256xf32> to vector<8x256xbf16>
    %c0_12 = arith.constant 0 : index
    %c0_13 = arith.constant 0 : index
    %18 = vector.load %arg6[%c0_12, %c0_13] : memref<256x128xbf16, #tpu.memory_space<vmem>>, vector<256x128xbf16>
    %cst_14 = arith.constant dense<0.000000e+00> : vector<8x128xf32>
    %19 = tpu.matmul %17, %18, %cst_14 {dimension_numbers = #tpu.dot_dimension_numbers<[1], [0], [0], [1], [0, 0, 1, 1], [], []>} : vector<8x256xbf16>, vector<256x128xbf16>, vector<8x128xf32> -> vector<8x128xf32>
    %20 = vector.extract_strided_slice %19 {offsets = [0, 0], sizes = [8, 8], strides = [1, 1]} : vector<8x128xf32> to vector<8x8xf32>
    %c0_15 = arith.constant 0 : index
    %c0_16 = arith.constant 0 : index
    %21 = vector.load %arg7[%c0_15, %c0_16] : memref<1x128xf32, #tpu.memory_space<vmem>>, vector<1x8xf32>
    %22 = vector.broadcast %21 : vector<1x8xf32> to vector<8x8xf32>
    %23 = arith.addf %20, %22 : vector<8x8xf32>
    %cst_17 = arith.constant 0.000000e+00 : f32
    %24 = vector.broadcast %cst_17 : f32 to vector<8x8xf32>
    %25 = arith.subf %24, %23 : vector<8x8xf32>
    %26 = math.exp %25 : vector<8x8xf32>
    %cst_18 = arith.constant 1.000000e+00 : f32
    %27 = vector.broadcast %cst_18 : f32 to vector<8x8xf32>
    %28 = arith.addf %27, %26 : vector<8x8xf32>
    %29 = tpu.reciprocal %28 {approx = true} : vector<8x8xf32> -> vector<8x8xf32>
    %c0_19 = arith.constant 0 : index
    %c0_20 = arith.constant 0 : index
    %30 = vector.load %arg8[%c0_19, %c0_20] : memref<8x8xf32, #tpu.memory_space<vmem>>, vector<8x8xf32>
    tpu.vector_store %arg8[%c0_19, %c0_20], %29 {strides = array<i32>} : memref<8x8xf32, #tpu.memory_space<vmem>>, vector<8x8xf32>,
    return
  }
  func.func @transform_0(%arg0: i32) -> (i32, i32) {
    %c0_i32 = arith.constant 0 : i32
    %c0_i32_0 = arith.constant 0 : i32
    return %arg0, %c0_i32 : i32, i32
  }
  func.func @transform_1(%arg0: i32) -> (i32, i32) {
    %c0_i32 = arith.constant 0 : i32
    %c0_i32_0 = arith.constant 0 : i32
    %c0_i32_1 = arith.constant 0 : i32
    return %c0_i32, %c0_i32_0 : i32, i32
  }
  func.func @transform_2(%arg0: i32) -> (i32, i32) {
    %c0_i32 = arith.constant 0 : i32
    %c0_i32_0 = arith.constant 0 : i32
    %c0_i32_1 = arith.constant 0 : i32
    return %c0_i32, %c0_i32_0 : i32, i32
  }
  func.func @transform_3(%arg0: i32) -> (i32, i32) {
    %c0_i32 = arith.constant 0 : i32
    %c0_i32_0 = arith.constant 0 : i32
    %c0_i32_1 = arith.constant 0 : i32
    return %c0_i32, %c0_i32_0 : i32, i32
  }
  func.func @transform_4(%arg0: i32) -> (i32, i32) {
    %c0_i32 = arith.constant 0 : i32
    %c0_i32_0 = arith.constant 0 : i32
    %c0_i32_1 = arith.constant 0 : i32
    return %c0_i32, %c0_i32_0 : i32, i32
  }
  func.func @transform_5(%arg0: i32) -> (i32, i32) {
    %c0_i32 = arith.constant 0 : i32
    %c0_i32_0 = arith.constant 0 : i32
    %c0_i32_1 = arith.constant 0 : i32
    return %c0_i32, %c0_i32_0 : i32, i32
  }
  func.func @transform_6(%arg0: i32) -> (i32, i32) {
    %c0_i32 = arith.constant 0 : i32
    %c0_i32_0 = arith.constant 0 : i32
    %c0_i32_1 = arith.constant 0 : i32
    return %c0_i32, %c0_i32_0 : i32, i32
  }
  func.func @transform_7(%arg0: i32) -> (i32, i32) {
    %c0_i32 = arith.constant 0 : i32
    %c0_i32_0 = arith.constant 0 : i32
    return %arg0, %c0_i32 : i32, i32
  }
}

</mosaic_0001>

<bundles_post_ra>
// kernel: tpu_custom_call.1
= control target key start
LH: loop header
LB: loop body
LE: loop exit
PB: predicated region body
PF: predicated region fallthrough
CT: control target
= control target key end

     0   :  { %12 = vsyncpa [#allocation3], 0  ;;  %s1090_s0 = inlined_call_operand.hbm [shape: f32[8,16], index: 0, kind: input, shape index: {}]   ;;  %s1091_s1 = inlined_call_operand.hbm [shape: bf16[16,256], index: 1, kind: input, shape index: {}]   ;;  %s1092_s2 = inlined_call_operand.hbm [shape: f32[1,256], index: 2, kind: input, shape index: {}]   ;;  %s1093_s3 = inlined_call_operand.hbm [shape: bf16[256,256], index: 3, kind: input, shape index: {}]   ;;  %s1094_s4 = inlined_call_operand.vmem [shape: f32[1,256], index: 4, kind: input, shape index: {}]   ;;  %s1095_s5 = inlined_call_operand.hbm [shape: bf16[256,128], index: 5, kind: input, shape index: {}]   ;;  %s1096_s6 = inlined_call_operand.vmem [shape: f32[1,128], index: 6, kind: input, shape index: {}]   ;;  %s1097_s7 = inlined_call_operand.hbm [shape: f32[8,8], index: 7, kind: output, shape index: {}]  }
   0x1   :  { %13 = vsyncpa [#allocation6], 0 }
   0x2   :  { %14 = vsyncpa [#allocation9], 0  ;;  %s31_s26 = sshll.u32 %s1091_s1, 4  ;;  %s32_s26 = int_to_ptr.hbm [resolvable:$true] %s31_s26 }
   0x3   :  { %15 = vsyncpa [#allocation4], 0  ;;  %s1014_s27 = smov [#allocation5]   ;;  %s55_s8 = sshll.u32 %s1093_s3, 4  ;;  %s56_s8 = int_to_ptr.hbm [resolvable:$true] %s55_s8 }
   0x4   :  { %s33_s28 = sshll.u32 %s1014_s27, 4  ;;  %s1015_s9 = smov 128   ;;  %s34_s28 = int_to_ptr.vmem [resolvable:$true] %s33_s28 }
   0x5   :  { %s1016_s10 = smov 8   ;;  %s1017_s11 = smov [#allocation8]  }
   0x6   :  { %39 = dma.hbm_to_vmem [thread:$0]  %s32_s26, 256, %s34_s28, [#allocation6], %s1015_s9, %s1015_s9, %s1016_s10  }
   0x7   :  { %s57_s12 = sshll.u32 %s1017_s11, 4  ;;  %s21_s15 = sshll.u32 %s1090_s0, 4  ;;  %s58_s12 = int_to_ptr.vmem [resolvable:$true] %s57_s12  ;;  %s22_s15 = int_to_ptr.hbm [resolvable:$true] %s21_s15 }
   0x8   :  { %63 = dma.hbm_to_vmem [thread:$0]  %s56_s8, 4096, %s58_s12, [#allocation9], %s1015_s9, %s1015_s9, %s1016_s10  }
   0x9   :  { %s45_s17 = sshll.u32 %s1092_s2, 4  ;;  %s1018_s18 = smov [#allocation2]   ;;  %s46_s17 = int_to_ptr.hbm [resolvable:$true] %s45_s17 }
   0xa   :  { %s23_s19 = sshll.u32 %s1018_s18, 4  ;;  %s1019_s3 = smov [#allocation7]   ;;  %s24_s19 = int_to_ptr.vmem [resolvable:$true] %s23_s19 }
   0xb   :  { %26 = dma.hbm_to_vmem [thread:$0]  %s22_s15, 128, %s24_s19, [#allocation3]  }
   0xc   :  { %s47_s20 = sshll.u32 %s1019_s3, 4  ;;  %s70_s23 = sshll.u32 %s1095_s5, 4  ;;  %s48_s20 = int_to_ptr.vmem [resolvable:$true] %s47_s20  ;;  %s71_s23 = int_to_ptr.hbm [resolvable:$true] %s70_s23 }
   0xd   :  { %50 = dma.hbm_to_vmem [thread:$0]  %s46_s17, 32, %s48_s20, [#allocation6]  }
   0xe   :  { %s1020_s0 = smov [#allocation10]   ;;  %s1021_s25 = smov 64  }
   0xf   :  { %s72_s24 = sshll.u32 %s1020_s0, 4  ;;  %s1022_s26 = smov 4   ;;  %s73_s24 = int_to_ptr.vmem [resolvable:$true] %s72_s24 }
  0x10   :  { %78 = dma.hbm_to_vmem [thread:$0]  %s71_s23, 2048, %s73_s24, [#allocation9], %s1021_s25, %s1021_s25, %s1022_s26  }
  0x11   :  { %1006 = dma.done.wait [#allocation3], 128  }
  0x12   :  { %1007 = vsyncadd [#allocation3], 4294967168 }
  0x13   :  { %1008 = dma.done.wait [#allocation6], 288  }
  0x14   :  { %1009 = vsyncadd [#allocation6], 4294967008 }
  0x15   :  { %1010 = dma.done.wait [#allocation9], 6144  }
  0x16   :  { %1011 = vsyncadd [#allocation9], 4294961152  ;;  %v597_v0 = vld [vmem:[#allocation5] sm:$0xf]  ;;  %v798_v1 = vld [vmem:[#allocation5 + $0x4] sm:$0xf0] }
  0x17   :  { %v797_v2 = vld [vmem:[#allocation5 + $0x4] sm:$0xf]  ;;  %v598_v3 = vor.u32 %v798_v1, %v597_v0  ;;  %v599_v4 = vld [vmem:[#allocation5 + $0x8] sm:$0xf0]  ;;  %v102_v5 = vld [vmem:[#allocation2] sm:$0xff]  ;;  %vm122_vm0 = vcmask 130048  }
  0x18   :  { %v663_v6 = vld [vmem:[#allocation8 + $0x70] sm:$0xf]  ;;  %v602_v7 = vor.u32 %v797_v2, %v599_v4  ;;  %v103_v8 = vpack.c.bf16 %v102_v5, %v102_v5  ;;  %v814_v9 = vld [vmem:[#allocation8 + $0x74] sm:$0xf0]  ;;  %v813_v14 = vld [vmem:[#allocation8 + $0x74] sm:$0xf] }
  0x19   :  { %v727_v10 = vld [vmem:[#allocation8 + $0xf0] sm:$0xf]  ;;  %v830_v11 = vld [vmem:[#allocation8 + $0xf4] sm:$0xf0]  ;;  %133 = vmatpush.bf16.msra.mxu0 %v598_v3  ;;  %v664_v12 = vor.u32 %v814_v9, %v663_v6  ;;  %v665_v15 = vld [vmem:[#allocation8 + $0x78] sm:$0xf0] }
  0x1a   :  { %v728_v13 = vor.u32 %v830_v11, %v727_v10  ;;  %v829_v16 = vld [vmem:[#allocation8 + $0xf4] sm:$0xf]  ;;  %146 = vmatpush.bf16.msra.mxu1 %v602_v7  ;;  %v668_v17 = vor.u32 %v813_v14, %v665_v15  ;;  %v729_v18 = vld [vmem:[#allocation8 + $0xf8] sm:$0xf0]  ;;  %v655_v19 = vld [vmem:[#allocation8 + $0x60] sm:$0xf] }
  0x1b   :  { %v812_v20 = vld [vmem:[#allocation8 + $0x64] sm:$0xf0]  ;;  %354 = vmatpush.bf16.msra.mxu2 %v664_v12  ;;  %v732_v21 = vor.u32 %v829_v16, %v729_v18  ;;  %v719_v23 = vld [vmem:[#allocation8 + $0xe0] sm:$0xf]  ;;  %v811_v25 = vld [vmem:[#allocation8 + $0x64] sm:$0xf] }
  0x1c   :  { %367 = vmatpush.bf16.msra.mxu3 %v728_v13  ;;  %v656_v22 = vor.u32 %v812_v20, %v655_v19  ;;  %v828_v24 = vld [vmem:[#allocation8 + $0xe4] sm:$0xf0]  ;;  %603 = vmatmul.msk.bf16.vlgmr.msra.gmra.mxu0 %vm122_vm0, %v103_v8  ;;  %v657_v27 = vld [vmem:[#allocation8 + $0x68] sm:$0xf0]  ;;  %v827_v28 = vld [vmem:[#allocation8 + $0xe4] sm:$0xf] }
  0x1d   :  { %v720_v26 = vor.u32 %v828_v24, %v719_v23  ;;  %v721_v29 = vld [vmem:[#allocation8 + $0xe8] sm:$0xf0]  ;;  %604 = vmatmul.msk.bf16.vlgmr.msra.gmra.mxu1 %vm122_vm0, %v103_v8  ;;  %380 = vmatpush.bf16.msrb.mxu0 %v668_v17  ;;  %v660_v30 = vor.u32 %v811_v25, %v657_v27  ;;  %v647_v31 = vld [vmem:[#allocation8 + $0x50] sm:$0xf]  ;;  %v810_v32 = vld [vmem:[#allocation8 + $0x54] sm:$0xf0] }
  0x1e   :  { %v711_v33 = vld [vmem:[#allocation8 + $0xd0] sm:$0xf]  ;;  %393 = vmatpush.bf16.msrb.mxu1 %v732_v21  ;;  %v724_v34 = vor.u32 %v827_v28, %v721_v29  ;;  %v826_v35 = vld [vmem:[#allocation8 + $0xd4] sm:$0xf0]  ;;  %v809_v36 = vld [vmem:[#allocation8 + $0x54] sm:$0xf]  ;;  %v648_v38 = vor.u32 %v810_v32, %v647_v31 }
  0x1f   :  { %v649_v37 = vld [vmem:[#allocation8 + $0x58] sm:$0xf0]  ;;  %355 = vmatpush.bf16.msra.mxu2 %v656_v22  ;;  %v712_v39 = vor.u32 %v826_v35, %v711_v33  ;;  %v825_v40 = vld [vmem:[#allocation8 + $0xd4] sm:$0xf]  ;;  %v639_v42 = vld [vmem:[#allocation8 + $0x40] sm:$0xf] }
  0x20   :  { %368 = vmatpush.bf16.msra.mxu3 %v720_v26  ;;  %v713_v41 = vld [vmem:[#allocation8 + $0xd8] sm:$0xf0]  ;;  %v808_v43 = vld [vmem:[#allocation8 + $0x44] sm:$0xf0]  ;;  %v703_v44 = vld [vmem:[#allocation8 + $0xc0] sm:$0xf]  ;;  %v652_v46 = vor.u32 %v809_v36, %v649_v37 }
  0x21   :  { %v824_v45 = vld [vmem:[#allocation8 + $0xc4] sm:$0xf0]  ;;  %381 = vmatpush.bf16.msrb.mxu0 %v660_v30  ;;  %v716_v47 = vor.u32 %v825_v40, %v713_v41  ;;  %v807_v48 = vld [vmem:[#allocation8 + $0x44] sm:$0xf]  ;;  %v641_v49 = vld [vmem:[#allocation8 + $0x48] sm:$0xf0]  ;;  %v640_v50 = vor.u32 %v808_v43, %v639_v42 }
  0x22   :  { %394 = vmatpush.bf16.msrb.mxu1 %v724_v34  ;;  %v704_v51 = vor.u32 %v824_v45, %v703_v44  ;;  %v823_v52 = vld [vmem:[#allocation8 + $0xc4] sm:$0xf]  ;;  %v705_v53 = vld [vmem:[#allocation8 + $0xc8] sm:$0xf0]  ;;  %v631_v54 = vld [vmem:[#allocation8 + $0x30] sm:$0xf]  ;;  %v644_v58 = vor.u32 %v807_v48, %v641_v49 }
  0x23   :  { %356 = vmatpush.bf16.msra.mxu2 %v648_v38  ;;  %v806_v55 = vld [vmem:[#allocation8 + $0x34] sm:$0xf0]  ;;  %v695_v56 = vld [vmem:[#allocation8 + $0xb0] sm:$0xf]  ;;  %v708_v59 = vor.u32 %v823_v52, %v705_v53  ;;  %v805_v60 = vld [vmem:[#allocation8 + $0x34] sm:$0xf] }
  0x24   :  { %369 = vmatpush.bf16.msra.mxu3 %v712_v39  ;;  %v822_v57 = vld [vmem:[#allocation8 + $0xb4] sm:$0xf0]  ;;  %v633_v61 = vld [vmem:[#allocation8 + $0x38] sm:$0xf0]  ;;  %v821_v62 = vld [vmem:[#allocation8 + $0xb4] sm:$0xf]  ;;  %v632_v63 = vor.u32 %v806_v55, %v631_v54 }
  0x25   :  { %382 = vmatpush.bf16.msrb.mxu0 %v652_v46  ;;  %v696_v0 = vor.u32 %v822_v57, %v695_v56  ;;  %v697_v1 = vld [vmem:[#allocation8 + $0xb8] sm:$0xf0]  ;;  %v623_v2 = vld [vmem:[#allocation8 + $0x20] sm:$0xf]  ;;  %v804_v3 = vld [vmem:[#allocation8 + $0x24] sm:$0xf0]  ;;  %v636_v6 = vor.u32 %v805_v60, %v633_v61 }
  0x26   :  { %395 = vmatpush.bf16.msrb.mxu1 %v716_v47  ;;  %v687_v4 = vld [vmem:[#allocation8 + $0xa0] sm:$0xf]  ;;  %v820_v5 = vld [vmem:[#allocation8 + $0xa4] sm:$0xf0]  ;;  %v700_v7 = vor.u32 %v821_v62, %v697_v1  ;;  %v803_v8 = vld [vmem:[#allocation8 + $0x24] sm:$0xf]  ;;  %v624_v10 = vor.u32 %v804_v3, %v623_v2 }
  0x27   :  { %357 = vmatpush.bf16.msra.mxu2 %v640_v50  ;;  %v625_v9 = vld [vmem:[#allocation8 + $0x28] sm:$0xf0]  ;;  %v688_v11 = vor.u32 %v820_v5, %v687_v4  ;;  %v819_v12 = vld [vmem:[#allocation8 + $0xa4] sm:$0xf]  ;;  %v615_v16 = vld [vmem:[#allocation8 + $0x10] sm:$0xf] }
  0x28   :  { %370 = vmatpush.bf16.msra.mxu3 %v704_v51  ;;  %v689_v13 = vld [vmem:[#allocation8 + $0xa8] sm:$0xf0]  ;;  %v628_v14 = vor.u32 %v803_v8, %v625_v9  ;;  %v802_v17 = vld [vmem:[#allocation8 + $0x14] sm:$0xf0]  ;;  %v679_v18 = vld [vmem:[#allocation8 + $0x90] sm:$0xf] }
  0x29   :  { %383 = vmatpush.bf16.msrb.mxu0 %v644_v58  ;;  %v692_v15 = vor.u32 %v819_v12, %v689_v13  ;;  %v616_v19 = vor.u32 %v802_v17, %v615_v16  ;;  %v818_v20 = vld [vmem:[#allocation8 + $0x94] sm:$0xf0]  ;;  %v801_v21 = vld [vmem:[#allocation8 + $0x14] sm:$0xf]  ;;  %v617_v22 = vld [vmem:[#allocation8 + $0x18] sm:$0xf0] }
  0x2a   :  { %396 = vmatpush.bf16.msrb.mxu1 %v708_v59  ;;  %v680_v23 = vor.u32 %v818_v20, %v679_v18  ;;  %v620_v24 = vor.u32 %v801_v21, %v617_v22  ;;  %v817_v25 = vld [vmem:[#allocation8 + $0x94] sm:$0xf]  ;;  %v681_v26 = vld [vmem:[#allocation8 + $0x98] sm:$0xf0]  ;;  %v607_v28 = vld [vmem:[#allocation8] sm:$0xf] }
  0x2b   :  { %358 = vmatpush.bf16.msra.mxu2 %v632_v63  ;;  %v684_v27 = vor.u32 %v817_v25, %v681_v26  ;;  %v800_v29 = vld [vmem:[#allocation8 + $0x4] sm:$0xf0]  ;;  %v671_v30 = vld [vmem:[#allocation8 + $0x80] sm:$0xf]  ;;  %v799_v33 = vld [vmem:[#allocation8 + $0x4] sm:$0xf] }
  0x2c   :  { %371 = vmatpush.bf16.msra.mxu3 %v696_v0  ;;  %v608_v31 = vor.u32 %v800_v29, %v607_v28  ;;  %v816_v32 = vld [vmem:[#allocation8 + $0x84] sm:$0xf0]  ;;  %v609_v34 = vld [vmem:[#allocation8 + $0x8] sm:$0xf0]  ;;  %v815_v37 = vld [vmem:[#allocation8 + $0x84] sm:$0xf] }
  0x2d   :  { %384 = vmatpush.bf16.msrb.mxu0 %v636_v6  ;;  %v672_v35 = vor.u32 %v816_v32, %v671_v30  ;;  %v612_v36 = vor.u32 %v799_v33, %v609_v34  ;;  %v673_v38 = vld [vmem:[#allocation8 + $0x88] sm:$0xf0]  ;;  %v846_v40 = vld [vmem:[#allocation10 + $0x78] sm:$0xff]  ;;  %v845_v42 = vld [vmem:[#allocation10 + $0x70] sm:$0xff]  ;;  %s1023_s28 = smov [#allocation11]   ;;  %s583_s9 = sshll.u32 %s1097_s7, 4  ;;  %s584_s9 = int_to_ptr.hbm [resolvable:$true] %s583_s9 }
  0x2e   :  { %397 = vmatpush.bf16.msrb.mxu1 %v700_v7  ;;  %v676_v39 = vor.u32 %v815_v37, %v673_v38  ;;  %v838_v41 = vld [vmem:[#allocation10 + $0x38] sm:$0xff]  ;;  %v837_v43 = vld [vmem:[#allocation10 + $0x30] sm:$0xff]  ;;  %v844_v44 = vld [vmem:[#allocation10 + $0x68] sm:$0xff]  ;;  %s581_s29 = sshll.u32 %s1023_s28, 4  ;;  %vm574_vm1 = vcmask 64512   ;;  %s582_s29 = int_to_ptr.vmem [resolvable:$true] %s581_s29 }
  0x2f   :  { %359 = vmatpush.bf16.msra.mxu2 %v624_v10  ;;  %v836_v45 = vld [vmem:[#allocation10 + $0x28] sm:$0xff]  ;;  %v843_v46 = vld [vmem:[#allocation10 + $0x60] sm:$0xff]  ;;  %v842_v48 = vld [vmem:[#allocation10 + $0x58] sm:$0xff] }
  0x30   :  { %372 = vmatpush.bf16.msra.mxu3 %v688_v11  ;;  %v835_v47 = vld [vmem:[#allocation10 + $0x20] sm:$0xff]  ;;  %v106_v49 = vld [vmem:[#allocation7] sm:$0x3]  ;;  %v841_v50 = vld [vmem:[#allocation10 + $0x50] sm:$0xff] }
  0x31   :  { %385 = vmatpush.bf16.msrb.mxu0 %v628_v14  ;;  %v108_v51 = vperm.slane %v106_v49, 0  ;;  %v109_v52 = vperm.slane %v106_v49, 1  ;;  %v834_v63 = vld [vmem:[#allocation10 + $0x18] sm:$0xff]  ;;  %v840_v0 = vld [vmem:[#allocation10 + $0x48] sm:$0xff]  ;;  %v833_v1 = vld [vmem:[#allocation10 + $0x10] sm:$0xff] }
  0x32   :  { %398 = vmatpush.bf16.msrb.mxu1 %v692_v15  ;;  %v839_v2 = vld [vmem:[#allocation10 + $0x40] sm:$0xff]  ;;  %v832_v3 = vld [vmem:[#allocation10 + $0x8] sm:$0xff] }
  0x33   :  { %360 = vmatpush.bf16.msra.mxu2 %v616_v19  ;;  %v831_v4 = vld [vmem:[#allocation10] sm:$0xff] }
  0x34   :  { %373 = vmatpush.bf16.msra.mxu3 %v680_v23  ;;  %v188_v5 = vld [vmem:[%s1094_s4] sm:$0x3] }
  0x35   :  { %386 = vmatpush.bf16.msrb.mxu0 %v620_v24  ;;  %v191_v6 = vperm.slane %v188_v5, 1  ;;  %v190_v11 = vperm.slane %v188_v5, 0  ;;  %v857_v25 = vld [vmem:[%s1096_s6] ss:$0 sm:$0xff] }
  0x36   :  { %399 = vmatpush.bf16.msrb.mxu1 %v684_v27 }
  0x37   :  { %361 = vmatpush.bf16.msra.mxu2 %v608_v31 }
  0x38   :  { %374 = vmatpush.bf16.msra.mxu3 %v672_v35 }
  0x39   :  { %387 = vmatpush.bf16.msrb.mxu0 %v612_v36 }
  0x3a   :  { %400 = vmatpush.bf16.msrb.mxu1 %v676_v39 }
  0x3b   :  { %538 = vmatpush.bf16.msrb.mxu2 %v838_v41 }
  0x3c   :  { %551 = vmatpush.bf16.msrb.mxu3 %v846_v40 }
  0x3f   :  { %539 = vmatpush.bf16.msrb.mxu2 %v837_v43 }
  0x40   :  { %552 = vmatpush.bf16.msrb.mxu3 %v845_v42 }
  0x43   :  { %540 = vmatpush.bf16.msrb.mxu2 %v836_v45 }
  0x44   :  { %553 = vmatpush.bf16.msrb.mxu3 %v844_v44 }
  0x47   :  { %541 = vmatpush.bf16.msrb.mxu2 %v835_v47 }
  0x48   :  { %554 = vmatpush.bf16.msrb.mxu3 %v843_v46 }
  0x4b   :  { %542 = vmatpush.bf16.msrb.mxu2 %v834_v63 }
  0x4c   :  { %555 = vmatpush.bf16.msrb.mxu3 %v842_v48 }
  0x4f   :  { %543 = vmatpush.bf16.msrb.mxu2 %v833_v1 }
  0x50   :  { %556 = vmatpush.bf16.msrb.mxu3 %v841_v50 }
  0x53   :  { %544 = vmatpush.bf16.msrb.mxu2 %v832_v3 }
  0x54   :  { %557 = vmatpush.bf16.msrb.mxu3 %v840_v0 }
  0x57   :  { %545 = vmatpush.bf16.msrb.mxu2 %v831_v4 }
  0x58   :  { %558 = vmatpush.bf16.msrb.mxu3 %v839_v2 }
  0x99   :  { %v135_v53 = vpop.f32.mrf.mxu0 }
  0x9a   :  { %v136_v54 = vadd.f32 %v135_v53, %v108_v51  ;;  %v148_v55 = vpop.f32.mrf.mxu1 }
  0x9b   :  { %v149_v56 = vadd.f32 %v148_v55, %v109_v52 }
  0x9c   :  { %v152_v57 = vmax.f32 %v136_v54, 0.0 }
  0x9d   :  { %v153_v58 = vmax.f32 %v149_v56, 0.0 }
  0x9e   :  { %v154_v59 = vpack.c.bf16 %v152_v57, %v152_v57 }
  0x9f   :  { %v155_v60 = vpack.c.bf16 %v153_v58, %v153_v58 }
  0xa0   :  { %362 = vmatmul.bf16.vlgmr.msra.gmra.mxu2 %v154_v59  ;;  %388 = vmatmul.bf16.vlgmr.msrb.gmra.mxu0 %v154_v59 }
  0xa1   :  { %375 = vmatmul.bf16.vlgmr.msra.gmra.mxu3 %v155_v60  ;;  %401 = vmatmul.bf16.vlgmr.msrb.gmra.mxu1 %v155_v60  ;;  %v137_v61 = vpop.f32.mrf.mxu0 }
  0xa2   :  { %v150_v62 = vpop.f32.mrf.mxu1 }
 0x11d   :  { %v389_v7 = vpop.f32.mrf.mxu0 }
 0x11e   :  { %v390_v8 = vadd.f32 %v389_v7, %v191_v6  ;;  %v402_v9 = vpop.f32.mrf.mxu1 }
 0x120   :  { %v403_v10 = vadd.f32 %v402_v9, %v390_v8 }
 0x122   :  { %v407_v12 = vmax.f32 %v403_v10, 0.0 }
 0x123   :  { %v363_v13 = vpop.f32.mrf.mxu2 }
 0x124   :  { %v409_v14 = vpack.c.bf16 %v407_v12, %v407_v12  ;;  %v364_v15 = vadd.f32 %v363_v13, %v190_v11  ;;  %v376_v16 = vpop.f32.mrf.mxu3 }
 0x125   :  { %v391_v17 = vpop.f32.mrf.mxu0 }
 0x126   :  { %v377_v18 = vadd.f32 %v376_v16, %v364_v15  ;;  %v404_v19 = vpop.f32.mrf.mxu1  ;;  %559 = vmatmul.bf16.vlgmr.msrb.gmra.mxu3 %v409_v14 }
 0x128   :  { %v406_v20 = vmax.f32 %v377_v18, 0.0 }
 0x12a   :  { %v408_v21 = vpack.c.bf16 %v406_v20, %v406_v20 }
 0x12b   :  { %v365_v22 = vpop.f32.mrf.mxu2 }
 0x12c   :  { %v378_v23 = vpop.f32.mrf.mxu3  ;;  %546 = vmatmul.bf16.vlgmr.msrb.gmra.mxu2 %v408_v21 }
 0x1a9   :  { %v560_v24 = vpop.f32.mrf.mxu3 }
 0x1af   :  { %v547_v26 = vpop.f32.mrf.mxu2 }
 0x1b0   :  { %v561_v27 = vadd.f32 %v560_v24, %v547_v26 }
 0x1b1   :  { %v562_v28 = vpop.f32.mrf.mxu3 }
 0x1b2   :  { %v568_v29 = vadd.f32 %v857_v25, %v561_v27 }
 0x1b4   :  { %v569_v30 = vsub.f32 0.0, %v568_v29 }
 0x1b6   :  { %v570_v31 = vmul.f32 1.442695, %v569_v30 }
 0x1b7   :  { %v549_v32 = vpop.f32.mrf.mxu2 }
 0x1b8   :  { %858 = vpow2.f32 %v570_v31 }
 0x1be   :  { %v859_v33 = vpop.eup %858 }
 0x1bf   :  { %v572_v34 = vadd.f32 1.0, %v859_v33 }
 0x1c1   :  { %860 = vrcp.f32 %v572_v34 }
 0x1c7   :  { %v861_v35 = vpop.eup %860 }
 0x1c8   :  { %575 = vst.msk [vmem:[#allocation11] sm:$0xff] %vm574_vm1, %v861_v35 }
 0x1c9   :  { %586 = dma.vmem_to_hbm [thread:$0]  %s582_s29, 128, %s584_s9, [#allocation4]  }
 0x1ca   :  { %1012 = dma.done.wait [#allocation4], 128  }
 0x1cb   :  { %1013 = vsyncadd [#allocation4], 4294967168 }
 0x1cc   :  { %591 = vsyncpa [#allocation3], 1 }
 0x1cd   :  { %592 = vsyncpa [#allocation6], 1 }
 0x1ce   :  { %593 = vsyncpa [#allocation9], 1 }
 0x1cf   :  { %594 = vsyncpa [#allocation4], 1 }

</bundles_post_ra>
